<compile_context>
chip_gen: v7x
topology: tpu7x:2x2x1
jax: 0.10.0
libtpu: 0.0.40
codegen_flags: <defaults>
</compile_context>

<pallas_src>
import jax
import jax.numpy as jnp
from jax.experimental import pallas as pl
from jax.experimental.pallas import tpu as pltpu


# ----------------------------- Pallas kernel -------------------------------

def _critic_kernel(x_ref, wh_ref, bh_ref, wv_ref, bv_ref, out_ref):
    # act0: ReLU on the raw input (VPU); cast to bf16 so the MXU matmul is a
    # single-pass bf16 x bf16 with f32 accumulation.
    y = jnp.maximum(x_ref[...], 0.0).astype(jnp.bfloat16)

    # hidden Linear + bias + ReLU  (MXU matmul, f32 accumulation).
    h = jnp.dot(y, wh_ref[...], preferred_element_type=jnp.float32)
    h = jnp.maximum(h + bh_ref[...], 0.0)            # bh is (1, H) -> broadcast

    # Value heads (N=2): VPU multiply + XLU lane-reduction instead of a second
    # MXU pass.  wv row 0 = ext head, row 1 = int head.
    ext = jnp.sum(h * wv_ref[0:1, :], axis=-1, keepdims=True)   # (TB, 1)
    itn = jnp.sum(h * wv_ref[1:2, :], axis=-1, keepdims=True)   # (TB, 1)

    out_ref[:, 0:1] = (ext + bv_ref[:, 0:1]).astype(out_ref.dtype)
    out_ref[:, 1:2] = (itn + bv_ref[:, 1:2]).astype(out_ref.dtype)


# ------------------------------- wrapper ------------------------------------

def _round_up(x, m):
    return ((x + m - 1) // m) * m


def _pick_batch_tile(b):
    """One big tile (cap 1024 rows): per-grid-step overhead is ~0.35 us and a
    1024x128 f32 x-tile is only ~0.5 MiB/buffer (fine even on v7x's 64 MiB
    VMEM).  Small batches get a single step (v5e/v6e are single-TC, a forced
    split is pure overhead); batches > 1024 naturally give >= 2 'parallel'
    steps, which v7x shards across its two TensorCores."""
    return min(1024, _round_up(max(b, 1), 16))


def model_critic_forward(x, params, *, batch_tile=None):
    """x: [B, inputs_count] float32.  params: dict from init_model_critic_params.

    Returns (ext_value, int_value), each [B, 1] float32.
    """
    B, D_in = x.shape
    H = params["wh"].shape[1]

    if batch_tile is None:
        batch_tile = _pick_batch_tile(B)
    # Multiple of 16 keeps bf16 sublane packing clean (16 rows / sublane group).
    batch_tile = _round_up(batch_tile, 16)

    grid = (pl.cdiv(B, batch_tile),)   # partial last block is auto-masked

    out = pl.pallas_call(
        _critic_kernel,
        out_shape=jax.ShapeDtypeStruct((B, 2), jnp.float32),
        grid_spec=pltpu.PrefetchScalarGridSpec(
            num_scalar_prefetch=0,
            grid=grid,
            in_specs=[
                pl.BlockSpec((batch_tile, D_in), lambda i: (i, 0)),  # x tile (f32)
                pl.BlockSpec((D_in, H), lambda i: (0, 0)),           # W_h (bf16, resident)
                pl.BlockSpec((1, H), lambda i: (0, 0)),              # b_h
                pl.BlockSpec((2, H), lambda i: (0, 0)),              # fused head W
                pl.BlockSpec((1, 2), lambda i: (0, 0)),              # fused head b
            ],
            out_specs=pl.BlockSpec((batch_tile, 2), lambda i: (i, 0)),
        ),
        compiler_params=pltpu.CompilerParams(
            dimension_semantics=("parallel",)),
    )(x, params["wh"], params["bh"], params["wv"], params["bv"])

    return out[:, 0:1], out[:, 1:2]


# --------------------------- parameter creation -----------------------------

def _orthogonal(key, shape, gain):
    """Mimics torch.nn.init.orthogonal_ (QR-based) deterministically in JAX."""
    rows, cols = shape
    flat = jax.random.normal(key, (rows, cols), dtype=jnp.float32)
    transposed = rows < cols
    a = flat.T if transposed else flat
    q, r = jnp.linalg.qr(a)
    q = q * jnp.sign(jnp.diag(r))[None, :]
    if transposed:
        q = q.T
    return (gain * q).astype(jnp.float32)


def init_model_critic_params(key, inputs_count, hidden_count):
    k_h, k_e, k_i = jax.random.split(key, 3)
    # PyTorch Linear weight is [out, in]; the hidden weight is stored as its
    # transpose [in, out] so the kernel does x @ W directly.
    w_hidden = _orthogonal(k_h, (hidden_count, inputs_count), 0.1)   # [H, D_in]
    w_ext = _orthogonal(k_e, (1, hidden_count), 0.01)                # [1, H]
    w_int = _orthogonal(k_i, (1, hidden_count), 0.01)                # [1, H]
    return {
        # Pre-cast to bf16: halves the weight HBM stream per call and keeps the
        # MXU in single-pass bf16 mode (accumulation stays f32 in the kernel).
        "wh": jnp.asarray(w_hidden.T, dtype=jnp.bfloat16),           # [D_in, H]
        "bh": jnp.zeros((1, hidden_count), jnp.float32),             # [1, H]
        # Fused value heads, precomputed once: row 0 = ext, row 1 = int.
        "wv": jnp.concatenate([w_ext, w_int], axis=0).astype(jnp.float32),  # [2, H]
        "bv": jnp.zeros((1, 2), jnp.float32),                        # [1, 2]
    }


# ---------------------------------- main ------------------------------------

if __name__ == "__main__":
    inputs_count = 128
    hidden_count = 128

    key = jax.random.PRNGKey(0)
    k_x, k_p = jax.random.split(key)
    params = init_model_critic_params(k_p, inputs_count, hidden_count)

    wh_f32 = params["wh"].astype(jnp.float32)

    def reference(xr):
        # Full-precision reference (PyTorch semantics).  The kernel's hidden
        # matmul uses bf16 operands with f32 accumulation, so tolerance is
        # loosened to 1e-4 (measured error here is ~1e-6 at these magnitudes).
        y = jnp.maximum(xr, 0.0)
        h = jnp.maximum(y @ wh_f32 + params["bh"], 0.0)
        ext = h @ params["wv"][0:1, :].T + params["bv"][:, 0:1]
        itn = h @ params["wv"][1:2, :].T + params["bv"][:, 1:2]
        return ext, itn

    fwd = jax.jit(model_critic_forward, static_argnames=("batch_tile",))
    TOL = 1e-4

    # Case 1: tiny batch, not a multiple of 8 -> single grid step whose block
    # is larger than the array (exercises the masked partial-block path).
    x_small = jax.random.normal(k_x, (6, inputs_count), dtype=jnp.float32)
    ext_v, int_v = fwd(x_small, params)
    jax.block_until_ready((ext_v, int_v))
    ext_r, int_r = reference(x_small)
    assert ext_v.shape == (6, 1) and int_v.shape == (6, 1)
    assert jnp.allclose(ext_v, ext_r, atol=TOL), "ext_value mismatch (small)"
    assert jnp.allclose(int_v, int_r, atol=TOL), "int_value mismatch (small)"

    # Case 2: explicit small tile -> multi-step 'parallel' grid with a partial
    # last block (40 = 2*16 + 8).
    x_multi = jax.random.normal(k_x, (40, inputs_count), dtype=jnp.float32)
    ext_v, int_v = fwd(x_multi, params, batch_tile=16)
    jax.block_until_ready((ext_v, int_v))
    ext_r, int_r = reference(x_multi)
    assert ext_v.shape == (40, 1) and int_v.shape == (40, 1)
    assert jnp.allclose(ext_v, ext_r, atol=TOL), "ext_value mismatch (multi)"
    assert jnp.allclose(int_v, int_r, atol=TOL), "int_value mismatch (multi)"

    # Case 3: default auto tile on a larger batch -> one big step (no forced
    # split on single-TC chips).
    x_def = jax.random.normal(k_x, (48, inputs_count), dtype=jnp.float32)
    ext_v, int_v = fwd(x_def, params)
    jax.block_until_ready((ext_v, int_v))
    ext_r, int_r = reference(x_def)
    assert ext_v.shape == (48, 1) and int_v.shape == (48, 1)
    assert jnp.allclose(ext_v, ext_r, atol=TOL), "ext_value mismatch (default)"
    assert jnp.allclose(int_v, int_r, atol=TOL), "int_value mismatch (default)"

    print("KERNEL_OK")
</pallas_src>

<mosaic_0001>
module attributes {stable_mosaic.version = 11 : i64} {
  func.func @_critic_kernel(%arg0: i32, %arg1: memref<16x128xf32, #tpu.memory_space<vmem>>, %arg2: memref<128x128xbf16, #tpu.memory_space<vmem>>, %arg3: memref<1x128xf32, #tpu.memory_space<vmem>>, %arg4: memref<2x128xf32, #tpu.memory_space<vmem>>, %arg5: memref<1x2xf32, #tpu.memory_space<vmem>>, %arg6: memref<16x2xf32, #tpu.memory_space<vmem>>) attributes {dimension_semantics = [#tpu.dimension_semantics<parallel>], iteration_bounds = array<i64: 1>, scalar_prefetch = 0 : i64, scratch_operands = 0 : i64, tpu.core_type = #tpu.core_type<tc>, window_params = [{transform_indices = @transform_0, window_bounds = array<i64: 16, 128>}, {pipeline_mode = #tpu.pipeline_mode<synchronous>, transform_indices = @transform_1, window_bounds = array<i64: 128, 128>}, {pipeline_mode = #tpu.pipeline_mode<synchronous>, transform_indices = @transform_2, window_bounds = array<i64: 1, 128>}, {pipeline_mode = #tpu.pipeline_mode<synchronous>, transform_indices = @transform_3, window_bounds = array<i64: 2, 128>}, {pipeline_mode = #tpu.pipeline_mode<synchronous>, transform_indices = @transform_4, window_bounds = array<i64: 1, 2>}, {transform_indices = @transform_5, window_bounds = array<i64: 16, 2>}]} {
    %c0 = arith.constant 0 : index
    %c0_0 = arith.constant 0 : index
    %0 = vector.load %arg1[%c0, %c0_0] : memref<16x128xf32, #tpu.memory_space<vmem>>, vector<16x128xf32>
    %cst = arith.constant 0.000000e+00 : f32
    %1 = vector.broadcast %cst : f32 to vector<16x128xf32>
    %2 = arith.maximumf %0, %1 : vector<16x128xf32>
    %3 = arith.truncf %2 : vector<16x128xf32> to vector<16x128xbf16>
    %c0_1 = arith.constant 0 : index
    %c0_2 = arith.constant 0 : index
    %4 = vector.load %arg2[%c0_1, %c0_2] : memref<128x128xbf16, #tpu.memory_space<vmem>>, vector<128x128xbf16>
    %cst_3 = arith.constant dense<0.000000e+00> : vector<16x128xf32>
    %5 = tpu.matmul %3, %4, %cst_3 {dimension_numbers = #tpu.dot_dimension_numbers<[1], [0], [0], [1], [0, 0, 1, 1], [], []>} : vector<16x128xbf16>, vector<128x128xbf16>, vector<16x128xf32> -> vector<16x128xf32>
    %c0_4 = arith.constant 0 : index
    %c0_5 = arith.constant 0 : index
    %6 = vector.load %arg3[%c0_4, %c0_5] : memref<1x128xf32, #tpu.memory_space<vmem>>, vector<1x128xf32>
    %7 = vector.broadcast %6 : vector<1x128xf32> to vector<16x128xf32>
    %8 = arith.addf %5, %7 : vector<16x128xf32>
    %cst_6 = arith.constant 0.000000e+00 : f32
    %9 = vector.broadcast %cst_6 : f32 to vector<16x128xf32>
    %10 = arith.maximumf %8, %9 : vector<16x128xf32>
    %c0_7 = arith.constant 0 : index
    %c0_8 = arith.constant 0 : index
    %11 = vector.load %arg4[%c0_7, %c0_8] : memref<2x128xf32, #tpu.memory_space<vmem>>, vector<1x128xf32>
    %12 = vector.broadcast %11 : vector<1x128xf32> to vector<16x128xf32>
    %13 = arith.mulf %10, %12 : vector<16x128xf32>
    %cst_9 = arith.constant dense<0.000000e+00> : vector<16xf32>
    %14 = vector.multi_reduction <add>, %13, %cst_9 [1] : vector<16x128xf32> to vector<16xf32>
    %15 = vector.shape_cast %14 : vector<16xf32> to vector<16x1xf32>
    %c1 = arith.constant 1 : index
    %c0_10 = arith.constant 0 : index
    %16 = vector.load %arg4[%c1, %c0_10] : memref<2x128xf32, #tpu.memory_space<vmem>>, vector<1x128xf32>
    %17 = vector.broadcast %16 : vector<1x128xf32> to vector<16x128xf32>
    %18 = arith.mulf %10, %17 : vector<16x128xf32>
    %cst_11 = arith.constant dense<0.000000e+00> : vector<16xf32>
    %19 = vector.multi_reduction <add>, %18, %cst_11 [1] : vector<16x128xf32> to vector<16xf32>
    %20 = vector.shape_cast %19 : vector<16xf32> to vector<16x1xf32>
    %c0_12 = arith.constant 0 : index
    %c0_13 = arith.constant 0 : index
    %21 = vector.load %arg5[%c0_12, %c0_13] : memref<1x2xf32, #tpu.memory_space<vmem>>, vector<1x1xf32>
    %22 = vector.broadcast %21 : vector<1x1xf32> to vector<16x1xf32>
    %23 = arith.addf %15, %22 : vector<16x1xf32>
    %c0_14 = arith.constant 0 : index
    %c0_15 = arith.constant 0 : index
    %24 = vector.load %arg6[%c0_14, %c0_15] : memref<16x2xf32, #tpu.memory_space<vmem>>, vector<16x1xf32>
    tpu.vector_store %arg6[%c0_14, %c0_15], %23 {strides = array<i32>} : memref<16x2xf32, #tpu.memory_space<vmem>>, vector<16x1xf32>,
    %c0_16 = arith.constant 0 : index
    %c1_17 = arith.constant 1 : index
    %25 = vector.load %arg5[%c0_16, %c1_17] : memref<1x2xf32, #tpu.memory_space<vmem>>, vector<1x1xf32>
    %26 = vector.broadcast %25 : vector<1x1xf32> to vector<16x1xf32>
    %27 = arith.addf %20, %26 : vector<16x1xf32>
    %c0_18 = arith.constant 0 : index
    %c1_19 = arith.constant 1 : index
    %28 = vector.load %arg6[%c0_18, %c1_19] : memref<16x2xf32, #tpu.memory_space<vmem>>, vector<16x1xf32>
    tpu.vector_store %arg6[%c0_18, %c1_19], %27 {strides = array<i32>} : memref<16x2xf32, #tpu.memory_space<vmem>>, vector<16x1xf32>,
    return
  }
  func.func @transform_0(%arg0: i32) -> (i32, i32) {
    %c0_i32 = arith.constant 0 : i32
    %c0_i32_0 = arith.constant 0 : i32
    return %arg0, %c0_i32 : i32, i32
  }
  func.func @transform_1(%arg0: i32) -> (i32, i32) {
    %c0_i32 = arith.constant 0 : i32
    %c0_i32_0 = arith.constant 0 : i32
    %c0_i32_1 = arith.constant 0 : i32
    return %c0_i32, %c0_i32_0 : i32, i32
  }
  func.func @transform_2(%arg0: i32) -> (i32, i32) {
    %c0_i32 = arith.constant 0 : i32
    %c0_i32_0 = arith.constant 0 : i32
    %c0_i32_1 = arith.constant 0 : i32
    return %c0_i32, %c0_i32_0 : i32, i32
  }
  func.func @transform_3(%arg0: i32) -> (i32, i32) {
    %c0_i32 = arith.constant 0 : i32
    %c0_i32_0 = arith.constant 0 : i32
    %c0_i32_1 = arith.constant 0 : i32
    return %c0_i32, %c0_i32_0 : i32, i32
  }
  func.func @transform_4(%arg0: i32) -> (i32, i32) {
    %c0_i32 = arith.constant 0 : i32
    %c0_i32_0 = arith.constant 0 : i32
    %c0_i32_1 = arith.constant 0 : i32
    return %c0_i32, %c0_i32_0 : i32, i32
  }
  func.func @transform_5(%arg0: i32) -> (i32, i32) {
    %c0_i32 = arith.constant 0 : i32
    %c0_i32_0 = arith.constant 0 : i32
    return %arg0, %c0_i32 : i32, i32
  }
}

</mosaic_0001>

<bundles_post_ra>
// kernel: model_critic_forward.1
= control target key start
LH: loop header
LB: loop body
LE: loop exit
PB: predicated region body
PF: predicated region fallthrough
CT: control target
= control target key end

     0   :  { %10 = vsyncpa [#allocation3], 0  ;;  %s439_s0 = inlined_call_operand.hbm [shape: f32[6,128], index: 0, kind: input, shape index: {}]   ;;  %s440_s1 = inlined_call_operand.hbm [shape: bf16[128,128], index: 1, kind: input, shape index: {}]   ;;  %s441_s2 = inlined_call_operand.vmem [shape: f32[1,128], index: 2, kind: input, shape index: {}]   ;;  %s442_s3 = inlined_call_operand.vmem [shape: f32[2,128], index: 3, kind: input, shape index: {}]   ;;  %s443_s4 = inlined_call_operand.vmem [shape: f32[1,2], index: 4, kind: input, shape index: {}]   ;;  %s444_s5 = inlined_call_operand.vmem [shape: f32[6,2], index: 5, kind: output, shape index: {}]  }
   0x1   :  { %11 = vsyncpa [#allocation5], 0 }
   0x2   :  { %16 = vsyncadd [#allocation3], 128  ;;  %s362_s18 = smov [#allocation2]   ;;  %s314_s22 = scalar_lea.hbm %s439_s0, 128 }
   0x3   :  { %s17_s19 = sshll.u32 %s362_s18, 4  ;;  %p315_p0 = scmp.ne.s32.totalorder %s439_s0, %s314_s22  ;;  %s18_s19 = int_to_ptr.vmem [resolvable:$true] %s17_s19 }
   0x4   :  { %p318_p1 = scmp.lt.u32.totalorder %s314_s22, %s439_s0 }
   0x6   :  { %p320_p2 = pnand %p318_p1, %p315_p0 }
   0x8   :  { %323 = shalt.err (!%p320_p2)
}
   0x9   :  { %s324_s27 = scalar_lea.vmem %s18_s19, 128  ;;  %s328_s28 = scalar_lea.vmem %s18_s19, 256 }
   0xa   :  { %p325_p3 = scmp.ne.s32.totalorder %s18_s19, %s324_s27  ;;  %p329_p4 = scmp.lt.s32.totalorder %s18_s19, %s18_s19 }
   0xb   :  { %p330_p5 = scmp.lt.s32.totalorder %s328_s28, %s324_s27 }
   0xd   :  { %p331_p6 = por %p330_p5, %p329_p4 }
   0xf   :  { %p332_p7 = pnand %p331_p6, %p325_p3 }
  0x11   :  { %335 = shalt.err (!%p332_p7)
}
  0x12   :  { %s363_s29 = smov 128   ;;  %s364_s30 = smov 8  }
  0x13   :  { %23 = dma.hbm_to_vmem [thread:$0]  %s439_s0, 128, %s18_s19, [#allocation3], %s363_s29, %s363_s29, %s364_s30  }
  0x14   :  { %s365_s8 = smov [#allocation4]   ;;  %s336_s12 = scalar_lea.hbm %s440_s1, 1024 }
  0x15   :  { %s29_s9 = sshll.u32 %s365_s8, 4  ;;  %p337_p8 = scmp.ne.s32.totalorder %s440_s1, %s336_s12  ;;  %s30_s9 = int_to_ptr.vmem [resolvable:$true] %s29_s9 }
  0x16   :  { %p340_p9 = scmp.lt.u32.totalorder %s336_s12, %s440_s1 }
  0x18   :  { %p342_p10 = pnand %p340_p9, %p337_p8 }
  0x1a   :  { %345 = shalt.err (!%p342_p10)
}
  0x1b   :  { %s346_s17 = scalar_lea.vmem %s30_s9, 1024  ;;  %p351_p12 = scmp.lt.s32.totalorder %s30_s9, %s30_s9 }
  0x1c   :  { %p347_p11 = scmp.ne.s32.totalorder %s30_s9, %s346_s17  ;;  %p352_p13 = scmp.lt.s32.totalorder %s346_s17, %s346_s17 }
  0x1e   :  { %p353_p0 = por %p352_p13, %p351_p12 }
  0x20   :  { %p354_p1 = pnand %p353_p0, %p347_p11 }
  0x22   :  { %357 = shalt.err (!%p354_p1)
}
  0x23   :  { %s366_s0 = smov 64   ;;  %s367_s18 = smov 4  }
  0x24   :  { %35 = dma.hbm_to_vmem [thread:$0]  %s440_s1, 1024, %s30_s9, [#allocation5], %s366_s0, %s366_s0, %s367_s18  }
  0x25   :  { %358 = dma.done.wait [#allocation3], 256  }
  0x26   :  { %359 = vsyncadd [#allocation3], 4294967040 }
  0x27   :  { %360 = dma.done.wait [#allocation5], 1024  }
  0x28   :  { %361 = vsyncadd [#allocation5], 4294966272  ;;  %v368_v0 = vmov 0.0   ;;  %vm369_vm0 = vmmov 0   ;;  %v306_v1 = vld [vmem:[#allocation4] sm:$0xff]   ;;  %v307_v2 = vld [vmem:[#allocation4 + $0x8] sm:$0xff]  }
  0x29   :  { %278 = vmatprep.subr.bf16.mxu0 %v368_v0  ;;  %294 = vmatprep.mubr.msk.bf16.mxu0 %vm369_vm0, %v368_v0  ;;  %v308_v3 = vld [vmem:[#allocation4 + $0x10] sm:$0xff]   ;;  %v309_v4 = vld [vmem:[#allocation4 + $0x18] sm:$0xff]   ;;  %v310_v5 = vld [vmem:[#allocation4 + $0x20] sm:$0xff]   ;;  %vm199_vm1 = vcmask 7168   ;;  %vm211_vm2 = vcmask 15368  }
  0x2a   :  { %279 = vmatpush3.bf16.msra.mxu0 %v306_v1  ;;  %v311_v6 = vld [vmem:[#allocation4 + $0x28] sm:$0xff]   ;;  %v312_v7 = vld [vmem:[#allocation4 + $0x30] sm:$0xff]   ;;  %v50_v9 = vld [vmem:[#allocation2 + $0x8] sm:$0xff] }
  0x2b   :  { %280 = vmatprep.subr.bf16.mxu0 %v368_v0  ;;  %v49_v8 = vld [vmem:[#allocation2] sm:$0xff]  ;;  %v52_v11 = vmax.f32 %v50_v9, 0.0  ;;  %v313_v12 = vld [vmem:[#allocation4 + $0x38] sm:$0xff]  }
  0x2c   :  { %v51_v10 = vmax.f32 %v49_v8, 0.0  ;;  %v256_v14 = vld [vmem:[%s441_s2] ss:$0 sm:$0xff]  ;;  %v266_v25 = vld [vmem:[%s442_s3 + $0x1] ss:$0 sm:$0xff] }
  0x2d   :  { %v265_v19 = vld [vmem:[%s442_s3] ss:$0 sm:$0xff] }
  0x2e   :  { %281 = vmatpush3.bf16.msra.mxu0 %v307_v2  ;;  %v53_v13 = vpack.c.bf16 %v52_v11, %v51_v10  ;;  %v267_v29 = vld [vmem:[%s443_s4] ss:$0 sm:$0xff] }
  0x2f   :  { %282 = vmatprep.subr.bf16.mxu0 %v368_v0 }
  0x32   :  { %283 = vmatpush3.bf16.msra.mxu0 %v308_v3 }
  0x33   :  { %284 = vmatprep.subr.bf16.mxu0 %v368_v0 }
  0x36   :  { %285 = vmatpush3.bf16.msra.mxu0 %v309_v4 }
  0x37   :  { %286 = vmatprep.subr.bf16.mxu0 %v368_v0 }
  0x3a   :  { %287 = vmatpush3.bf16.msra.mxu0 %v310_v5 }
  0x3b   :  { %288 = vmatprep.subr.bf16.mxu0 %v368_v0 }
  0x3e   :  { %289 = vmatpush3.bf16.msra.mxu0 %v311_v6 }
  0x3f   :  { %290 = vmatprep.subr.bf16.mxu0 %v368_v0 }
  0x42   :  { %291 = vmatpush3.bf16.msra.mxu0 %v312_v7 }
  0x43   :  { %292 = vmatprep.subr.bf16.mxu0 %v368_v0 }
  0x46   :  { %293 = vmatpush3.bf16.msra.mxu0 %v313_v12 }
  0x49   :  { %295 = vmatmul.mubr.bf16.vlgmr.msra.gmra.mrb[0].mxu0 %v53_v13 }
 0x11c   :  { %v159_v15 = vpop.f32.mrb[0].mxu0 }
 0x11d   :  { %v160_v16 = vadd.f32 %v256_v14, %v159_v15  ;;  %v296_v17 = vpop.f32.mrb[1].mxu0 }
 0x11e   :  { %v162_v18 = vpop.f32.mrb[2].mxu0 }
 0x11f   :  { %v166_v20 = vmax.f32 %v160_v16, 0.0  ;;  %v163_v21 = vadd.f32 %v256_v14, %v162_v18  ;;  %v297_v22 = vpop.f32.mrb[3].mxu0 }
 0x121   :  { %v167_v23 = vmax.f32 %v163_v21, 0.0  ;;  %v173_v24 = vmul.f32 %v265_v19, %v166_v20  ;;  %v184_v27 = vmul.f32 %v266_v25, %v166_v20 }
 0x123   :  { %175 = vadd.xlane.f32.xlu0 %v173_v24  ;;  %v174_v26 = vmul.f32 %v265_v19, %v167_v23  ;;  %v185_v28 = vmul.f32 %v266_v25, %v167_v23 }
 0x125   :  { %177 = vadd.xlane.f32.xlu1 %v174_v26 }
 0x127   :  { %186 = vadd.xlane.f32.xlu0 %v184_v27 }
 0x129   :  { %188 = vadd.xlane.f32.xlu1 %v185_v28 }
 0x1b0   :  { %v176_v30 = vpop.xlane.xlu0 %175 }
 0x1b1   :  { %v197_v31 = vadd.f32 %v267_v29, %v176_v30 }
 0x1b2   :  { %v178_v32 = vpop.xlane.xlu1 %177 }
 0x1b3   :  { %200 = vst.msk [vmem:[#allocation6] sm:$0xff] %vm199_vm1, %v197_v31 }
 0x1b4   :  { %v187_v33 = vpop.xlane.xlu0 %186 }
 0x1b5   :  { %v209_v34 = vadd.f32 %v267_v29, %v187_v33 }
 0x1b6   :  { %v189_v35 = vpop.xlane.xlu1 %188 }
 0x1b7   :  { %212 = vst.msk [vmem:[#allocation6] sm:$0xff] %vm211_vm2, %v209_v34 }
 0x1be   :  { %v243_v36 = vld [vmem:[#allocation6] sm:$0xff] }
 0x1bf   :  { %244 = vst [vmem:[%s444_s5] sm:$0xff] %v243_v36 }
 0x1c0   :  { %250 = vsyncpa [#allocation3], 1 }
 0x1c1   :  { %251 = vsyncpa [#allocation5], 1 }

</bundles_post_ra>
